<compile_context>
chip_gen: v7x
topology: tpu7x:2x2x1
jax: 0.10.0
libtpu: 0.0.40
codegen_flags: <defaults>
</compile_context>

<pallas_src>
import jax
import jax.numpy as jnp
from jax.experimental import pallas as pl
from jax.experimental.pallas import tpu as pltpu


def _round_up(x, m):
    return (x + m - 1) // m * m


def dga_kernel(p_pre_ref, sem_ref, w_sem_ref, w_c_ref, b_c_ref, w_out_ref,
               b_out_ref, out_ref):
    # fc_semantic: (BM, 256) bf16 @ (256, 128) bf16 -> f32 (bias folded below).
    s = jnp.dot(sem_ref[...], w_sem_ref[...],
                preferred_element_type=jnp.float32)

    # concat([phonetic_proj, semantic]) along lanes -> (BM, 256) bf16, then a
    # single K=256 matmul for fc_combined (all three biases pre-folded into
    # b_c_ref in the wrapper).
    cat = jnp.concatenate([p_pre_ref[...], s.astype(jnp.bfloat16)], axis=-1)
    h = (jnp.dot(cat, w_c_ref[...], preferred_element_type=jnp.float32)
         + b_c_ref[...])
    h = jnp.maximum(h, 0.0)                                    # ReLU (f32, VPU)

    # fc_output (N=1): VPU multiply + lane reduce instead of an MXU dot.
    o = jnp.sum(h * w_out_ref[...], axis=-1, keepdims=True) + b_out_ref[0, 0]

    # sigmoid: exp and approximate reciprocal both issue on the EUP slot.
    out_ref[...] = pl.reciprocal(1.0 + jnp.exp(-o), approx=True)


def dga_forward(phonetic_token, semantic_embed, params, *, block_b=512):
    """phonetic_token: (B, S) int32, semantic_embed: (B, 256) f32 -> (B, 1) f32."""
    f32 = jnp.float32
    bf16 = jnp.bfloat16
    B = phonetic_token.shape[0]

    # ---- phonetic path pre-projection (glue, outside the kernel) ------------
    # fc_phonetic(mean(E[tok])) == mean((E @ W_ph)[tok]) + b_ph  (linearity).
    proj_table = params["embedding"].astype(f32) @ params["w_ph"].astype(f32)  # (V,128)
    p_pre = jnp.take(proj_table, phonetic_token, axis=0).mean(axis=1)          # (B,128)

    # ---- fold fc_phonetic / fc_semantic biases into the fc_combined bias ----
    w_c = params["w_c"].astype(f32)                                            # (256,64)
    b_c_eff = (params["b_ph"].astype(f32) @ w_c[:128]
               + params["b_sem"].astype(f32) @ w_c[128:]
               + params["b_c"].astype(f32))                                    # (1,64)

    w_out_row = params["w_out"].reshape(1, 64).astype(f32)                     # (1,64)
    b_out = params["b_out"].reshape(1, 1).astype(f32)                          # (1,1) SMEM

    # ---- batch tiling / padding ---------------------------------------------
    BM = min(block_b, _round_up(B, 8))          # batch rows per grid step
    Bp = _round_up(B, BM)
    grid = (Bp // BM,)
    if Bp != B:
        pad = Bp - B
        p_pre = jnp.pad(p_pre, ((0, pad), (0, 0)))
        semantic_embed = jnp.pad(semantic_embed, ((0, pad), (0, 0)))

    kernel_inputs = (
        p_pre.astype(bf16),                     # (Bp, 128) bf16
        semantic_embed.astype(bf16),            # (Bp, 256) bf16
        params["w_sem"].astype(bf16),           # (256, 128) bf16, resident
        params["w_c"].astype(bf16),             # (256, 64)  bf16, resident
        b_c_eff,                                # (1, 64) f32, resident
        w_out_row,                              # (1, 64) f32, resident
        b_out,                                  # (1, 1)  f32, SMEM scalar
    )

    def batch_spec(cols):
        return pl.BlockSpec((BM, cols), lambda i: (i, 0))

    def resident_spec(shape):
        return pl.BlockSpec(shape, lambda i: (0, 0))

    out = pl.pallas_call(
        dga_kernel,
        out_shape=jax.ShapeDtypeStruct((Bp, 1), jnp.float32),
        grid=grid,
        in_specs=[
            batch_spec(128),                                     # p_pre
            batch_spec(256),                                     # semantic
            resident_spec((256, 128)),                           # w_sem
            resident_spec((256, 64)),                            # w_c
            resident_spec((1, 64)),                              # b_c_eff
            resident_spec((1, 64)),                              # w_out_row
            pl.BlockSpec(memory_space=pltpu.MemorySpace.SMEM),   # b_out scalar
        ],
        out_specs=pl.BlockSpec((BM, 1), lambda i: (i, 0)),
        compiler_params=pltpu.CompilerParams(
            dimension_semantics=("parallel",),
            vmem_limit_bytes=32 * 1024 * 1024,
        ),
    )(*kernel_inputs)
    return out[:B]


def init_params(key, vocab_size, embedding_dim):
    ks = jax.random.split(key, 10)
    scale = 0.05
    params = {
        "embedding": scale * jax.random.normal(ks[0], (vocab_size, embedding_dim), jnp.float32),
        # fc_phonetic: Linear(embedding_dim, 128) stored transposed (in, out)
        "w_ph": scale * jax.random.normal(ks[1], (embedding_dim, 128), jnp.float32),
        "b_ph": scale * jax.random.normal(ks[2], (1, 128), jnp.float32),
        # fc_semantic: Linear(256, 128)
        "w_sem": scale * jax.random.normal(ks[3], (256, 128), jnp.float32),
        "b_sem": scale * jax.random.normal(ks[4], (1, 128), jnp.float32),
        # fc_combined: Linear(256, 64)
        "w_c": scale * jax.random.normal(ks[5], (256, 64), jnp.float32),
        "b_c": scale * jax.random.normal(ks[6], (1, 64), jnp.float32),
        # fc_output: Linear(64, 1)
        "w_out": scale * jax.random.normal(ks[7], (64, 1), jnp.float32),
        "b_out": scale * jax.random.normal(ks[8], (1, 1), jnp.float32),
    }
    return params


def reference_forward(phonetic_token, semantic_embed, params):
    """Pure-JAX f32 reference matching the PyTorch forward semantics."""
    ph = jnp.take(params["embedding"], phonetic_token, axis=0).mean(axis=1)
    p = ph @ params["w_ph"] + params["b_ph"]
    s = semantic_embed @ params["w_sem"] + params["b_sem"]
    cat = jnp.concatenate([p, s], axis=1)
    h = jax.nn.relu(cat @ params["w_c"] + params["b_c"])
    o = h @ params["w_out"] + params["b_out"]
    return jax.nn.sigmoid(o)


if __name__ == "__main__":
    key = jax.random.PRNGKey(0)
    k_tok, k_sem, k_param = jax.random.split(key, 3)

    # Small shapes consistent with the module.
    B = 2                 # batch
    S = 8                 # phonetic sequence length
    VOCAB = 32            # phonetic_vocab_size
    EMB = 16              # embedding_dim

    phonetic_token = jax.random.randint(k_tok, (B, S), 0, VOCAB, dtype=jnp.int32)
    semantic_embed = jax.random.normal(k_sem, (B, 256), jnp.float32)
    params = init_params(k_param, VOCAB, EMB)

    out = jax.block_until_ready(dga_forward(phonetic_token, semantic_embed, params))
    ref = reference_forward(phonetic_token, semantic_embed, params)
    assert out.shape == (B, 1)
    assert jnp.allclose(out, ref, atol=1e-2, rtol=1e-2), (out, ref)

    # Larger batch: exercises the multi-step batch grid + padding path.
    B2 = 600
    k_tok2, k_sem2 = jax.random.split(jax.random.PRNGKey(1), 2)
    tok2 = jax.random.randint(k_tok2, (B2, S), 0, VOCAB, dtype=jnp.int32)
    sem2 = jax.random.normal(k_sem2, (B2, 256), jnp.float32)
    out2 = jax.block_until_ready(dga_forward(tok2, sem2, params, block_b=256))
    ref2 = reference_forward(tok2, sem2, params)
    assert out2.shape == (B2, 1)
    assert jnp.allclose(out2, ref2, atol=1e-2, rtol=1e-2), (out2, ref2)

    print("KERNEL_OK")
</pallas_src>

<mosaic_0001>
module attributes {stable_mosaic.version = 11 : i64} {
  func.func @dga_kernel(%arg0: i32, %arg1: memref<8x128xbf16, #tpu.memory_space<vmem>>, %arg2: memref<8x256xbf16, #tpu.memory_space<vmem>>, %arg3: memref<256x128xbf16, #tpu.memory_space<vmem>>, %arg4: memref<256x64xbf16, #tpu.memory_space<vmem>>, %arg5: memref<1x64xf32, #tpu.memory_space<vmem>>, %arg6: memref<1x64xf32, #tpu.memory_space<vmem>>, %arg7: memref<1x1xf32, #tpu.memory_space<smem>>, %arg8: memref<8x1xf32, #tpu.memory_space<vmem>>) attributes {dimension_semantics = [#tpu.dimension_semantics<parallel>], iteration_bounds = array<i64: 1>, scalar_prefetch = 0 : i64, scratch_operands = 0 : i64, tpu.core_type = #tpu.core_type<tc>, window_params = [{transform_indices = @transform_0, window_bounds = array<i64: 8, 128>}, {transform_indices = @transform_1, window_bounds = array<i64: 8, 256>}, {pipeline_mode = #tpu.pipeline_mode<synchronous>, transform_indices = @transform_2, window_bounds = array<i64: 256, 128>}, {pipeline_mode = #tpu.pipeline_mode<synchronous>, transform_indices = @transform_3, window_bounds = array<i64: 256, 64>}, {pipeline_mode = #tpu.pipeline_mode<synchronous>, transform_indices = @transform_4, window_bounds = array<i64: 1, 64>}, {pipeline_mode = #tpu.pipeline_mode<synchronous>, transform_indices = @transform_5, window_bounds = array<i64: 1, 64>}, {transform_indices = @transform_6, window_bounds = array<i64: 1, 1>}, {transform_indices = @transform_7, window_bounds = array<i64: 8, 1>}]} {
    %c0 = arith.constant 0 : index
    %c0_0 = arith.constant 0 : index
    %0 = vector.load %arg2[%c0, %c0_0] : memref<8x256xbf16, #tpu.memory_space<vmem>>, vector<8x256xbf16>
    %c0_1 = arith.constant 0 : index
    %c0_2 = arith.constant 0 : index
    %1 = vector.load %arg3[%c0_1, %c0_2] : memref<256x128xbf16, #tpu.memory_space<vmem>>, vector<256x128xbf16>
    %cst = arith.constant dense<0.000000e+00> : vector<8x128xf32>
    %2 = tpu.matmul %0, %1, %cst {dimension_numbers = #tpu.dot_dimension_numbers<[1], [0], [0], [1], [0, 0, 1, 1], [], []>} : vector<8x256xbf16>, vector<256x128xbf16>, vector<8x128xf32> -> vector<8x128xf32>
    %c0_3 = arith.constant 0 : index
    %c0_4 = arith.constant 0 : index
    %3 = vector.load %arg1[%c0_3, %c0_4] : memref<8x128xbf16, #tpu.memory_space<vmem>>, vector<8x128xbf16>
    %4 = arith.truncf %2 : vector<8x128xf32> to vector<8x128xbf16>
    %5 = tpu.concatenate %3, %4 in 1 : vector<8x128xbf16>, vector<8x128xbf16> -> vector<8x256xbf16>
    %c0_5 = arith.constant 0 : index
    %c0_6 = arith.constant 0 : index
    %6 = vector.load %arg4[%c0_5, %c0_6] : memref<256x64xbf16, #tpu.memory_space<vmem>>, vector<256x64xbf16>
    %cst_7 = arith.constant dense<0.000000e+00> : vector<8x64xf32>
    %7 = tpu.matmul %5, %6, %cst_7 {dimension_numbers = #tpu.dot_dimension_numbers<[1], [0], [0], [1], [0, 0, 1, 1], [], []>} : vector<8x256xbf16>, vector<256x64xbf16>, vector<8x64xf32> -> vector<8x64xf32>
    %c0_8 = arith.constant 0 : index
    %c0_9 = arith.constant 0 : index
    %8 = vector.load %arg5[%c0_8, %c0_9] : memref<1x64xf32, #tpu.memory_space<vmem>>, vector<1x64xf32>
    %9 = vector.broadcast %8 : vector<1x64xf32> to vector<8x64xf32>
    %10 = arith.addf %7, %9 : vector<8x64xf32>
    %cst_10 = arith.constant 0.000000e+00 : f32
    %11 = vector.broadcast %cst_10 : f32 to vector<8x64xf32>
    %12 = arith.maximumf %10, %11 : vector<8x64xf32>
    %c0_11 = arith.constant 0 : index
    %c0_12 = arith.constant 0 : index
    %13 = vector.load %arg6[%c0_11, %c0_12] : memref<1x64xf32, #tpu.memory_space<vmem>>, vector<1x64xf32>
    %14 = vector.broadcast %13 : vector<1x64xf32> to vector<8x64xf32>
    %15 = arith.mulf %12, %14 : vector<8x64xf32>
    %cst_13 = arith.constant dense<0.000000e+00> : vector<8xf32>
    %16 = vector.multi_reduction <add>, %15, %cst_13 [1] : vector<8x64xf32> to vector<8xf32>
    %17 = vector.shape_cast %16 : vector<8xf32> to vector<8x1xf32>
    %c0_14 = arith.constant 0 : index
    %c0_15 = arith.constant 0 : index
    %18 = memref.load %arg7[%c0_14, %c0_15] : memref<1x1xf32, #tpu.memory_space<smem>>
    %19 = vector.broadcast %18 : f32 to vector<8x1xf32>
    %20 = arith.addf %17, %19 : vector<8x1xf32>
    %cst_16 = arith.constant 0.000000e+00 : f32
    %21 = vector.broadcast %cst_16 : f32 to vector<8x1xf32>
    %22 = arith.subf %21, %20 : vector<8x1xf32>
    %23 = math.exp %22 : vector<8x1xf32>
    %cst_17 = arith.constant 1.000000e+00 : f32
    %24 = vector.broadcast %cst_17 : f32 to vector<8x1xf32>
    %25 = arith.addf %24, %23 : vector<8x1xf32>
    %26 = tpu.reciprocal %25 {approx = true} : vector<8x1xf32> -> vector<8x1xf32>
    %c0_18 = arith.constant 0 : index
    %c0_19 = arith.constant 0 : index
    %27 = vector.load %arg8[%c0_18, %c0_19] : memref<8x1xf32, #tpu.memory_space<vmem>>, vector<8x1xf32>
    tpu.vector_store %arg8[%c0_18, %c0_19], %26 {strides = array<i32>} : memref<8x1xf32, #tpu.memory_space<vmem>>, vector<8x1xf32>,
    return
  }
  func.func @transform_0(%arg0: i32) -> (i32, i32) {
    %c0_i32 = arith.constant 0 : i32
    %c0_i32_0 = arith.constant 0 : i32
    return %arg0, %c0_i32 : i32, i32
  }
  func.func @transform_1(%arg0: i32) -> (i32, i32) {
    %c0_i32 = arith.constant 0 : i32
    %c0_i32_0 = arith.constant 0 : i32
    return %arg0, %c0_i32 : i32, i32
  }
  func.func @transform_2(%arg0: i32) -> (i32, i32) {
    %c0_i32 = arith.constant 0 : i32
    %c0_i32_0 = arith.constant 0 : i32
    %c0_i32_1 = arith.constant 0 : i32
    return %c0_i32, %c0_i32_0 : i32, i32
  }
  func.func @transform_3(%arg0: i32) -> (i32, i32) {
    %c0_i32 = arith.constant 0 : i32
    %c0_i32_0 = arith.constant 0 : i32
    %c0_i32_1 = arith.constant 0 : i32
    return %c0_i32, %c0_i32_0 : i32, i32
  }
  func.func @transform_4(%arg0: i32) -> (i32, i32) {
    %c0_i32 = arith.constant 0 : i32
    %c0_i32_0 = arith.constant 0 : i32
    %c0_i32_1 = arith.constant 0 : i32
    return %c0_i32, %c0_i32_0 : i32, i32
  }
  func.func @transform_5(%arg0: i32) -> (i32, i32) {
    %c0_i32 = arith.constant 0 : i32
    %c0_i32_0 = arith.constant 0 : i32
    %c0_i32_1 = arith.constant 0 : i32
    return %c0_i32, %c0_i32_0 : i32, i32
  }
  func.func @transform_6(%arg0: i32) -> (i32, i32) {
    %c0_i32 = arith.constant 0 : i32
    %c0_i32_0 = arith.constant 0 : i32
    %c0_i32_1 = arith.constant 0 : i32
    return %c0_i32, %c0_i32_0 : i32, i32
  }
  func.func @transform_7(%arg0: i32) -> (i32, i32) {
    %c0_i32 = arith.constant 0 : i32
    %c0_i32_0 = arith.constant 0 : i32
    return %arg0, %c0_i32 : i32, i32
  }
}

</mosaic_0001>

<bundles_post_ra>
// kernel: tpu_custom_call.1
= control target key start
LH: loop header
LB: loop body
LE: loop exit
PB: predicated region body
PF: predicated region fallthrough
CT: control target
= control target key end

     0   :  { %vm390_vm0 = vcmask 523264   ;;  %vm402_vm1 = vcmask 7168   ;;  %s680_s2 = inlined_call_operand.vmem [shape: bf16[256,128], index: 2, kind: input, shape index: {}]   ;;  %s681_s1 = inlined_call_operand.vmem [shape: bf16[8,256], index: 1, kind: input, shape index: {}]   ;;  %s682_s3 = inlined_call_operand.vmem [shape: bf16[256,64], index: 3, kind: input, shape index: {}]   ;;  %s683_s0 = inlined_call_operand.vmem [shape: bf16[8,128], index: 0, kind: input, shape index: {}]   ;;  %s684_s4 = inlined_call_operand.vmem [shape: f32[1,64], index: 4, kind: input, shape index: {}]   ;;  %s685_s5 = inlined_call_operand.vmem [shape: f32[1,64], index: 5, kind: input, shape index: {}]   ;;  %s686_s6 = inlined_call_operand.<no memory space> [shape: f32[1,1], index: 6, kind: input, shape index: {}]   ;;  %s687_s7 = inlined_call_operand.vmem [shape: f32[8,1], index: 7, kind: output, shape index: {}]  }
   0x1   :  { %v488_v0 = vld [vmem:[%s680_s2 + $0x40] sm:$0xff]   ;;  %v490_v2 = vld [vmem:[%s680_s2 + $0x48] sm:$0xff]   ;;  %v492_v4 = vld [vmem:[%s680_s2 + $0x50] sm:$0xff]   ;;  %v395_v53 = vstv %s686_s6 }
   0x2   :  { %v489_v1 = vld [vmem:[%s680_s2] sm:$0xff]   ;;  %444 = vmatprep.subr.bf16.mxu0 %v488_v0  ;;  %v491_v3 = vld [vmem:[%s680_s2 + $0x8] sm:$0xff]   ;;  %v493_v5 = vld [vmem:[%s680_s2 + $0x10] sm:$0xff]  }
   0x3   :  { %445 = vmatpush3.bf16.msra.mxu0 %v489_v1  ;;  %v494_v6 = vld [vmem:[%s680_s2 + $0x58] sm:$0xff]   ;;  %v496_v8 = vld [vmem:[%s680_s2 + $0x60] sm:$0xff]   ;;  %v498_v10 = vld [vmem:[%s680_s2 + $0x68] sm:$0xff]  }
   0x4   :  { %446 = vmatprep.subr.bf16.mxu0 %v490_v2  ;;  %v495_v7 = vld [vmem:[%s680_s2 + $0x18] sm:$0xff]   ;;  %v497_v9 = vld [vmem:[%s680_s2 + $0x20] sm:$0xff]   ;;  %v499_v12 = vld [vmem:[%s680_s2 + $0x28] sm:$0xff]  }
   0x5   :  { %v28_v11 = vld [vmem:[%s681_s1] sm:$0xff]  ;;  %v508_v16 = vld [vmem:[%s682_s3 + $0x48] sm:$0xff]   ;;  %v500_v17 = vld [vmem:[%s680_s2 + $0x70] sm:$0xff]  }
   0x6   :  { %v409_v13 = vcombine.high %v28_v11, %v28_v11  ;;  %v506_v14 = vld [vmem:[%s682_s3 + $0x40] sm:$0xff]   ;;  %v509_v18 = vld [vmem:[%s682_s3 + $0x8] sm:$0xff]   ;;  %v510_v19 = vld [vmem:[%s682_s3 + $0x50] sm:$0xff]   ;;  %v408_v27 = vcombine.low %v28_v11, %v28_v11 }
   0x7   :  { %447 = vmatpush3.bf16.msra.mxu0 %v491_v3  ;;  %v507_v15 = vld [vmem:[%s682_s3] sm:$0xff]   ;;  %466 = vmatprep.subr.bf16.mxu1 %v506_v14  ;;  %v501_v20 = vld [vmem:[%s680_s2 + $0x30] sm:$0xff]   ;;  %v502_v21 = vld [vmem:[%s680_s2 + $0x78] sm:$0xff]  }
   0x8   :  { %448 = vmatprep.subr.bf16.mxu0 %v492_v4  ;;  %196 = vmatprep.mubr.bf16.mxu0 %v409_v13  ;;  %v511_v22 = vld [vmem:[%s682_s3 + $0x10] sm:$0xff]   ;;  %v512_v23 = vld [vmem:[%s682_s3 + $0x58] sm:$0xff]   ;;  %v514_v26 = vld [vmem:[%s682_s3 + $0x60] sm:$0xff]  }
   0x9   :  { %467 = vmatpush3.bf16.msra.mxu1 %v507_v15  ;;  %v503_v24 = vld [vmem:[%s680_s2 + $0x38] sm:$0xff]   ;;  %v515_v28 = vld [vmem:[%s682_s3 + $0x20] sm:$0xff]   ;;  %v516_v29 = vld [vmem:[%s682_s3 + $0x68] sm:$0xff]  }
   0xa   :  { %468 = vmatprep.subr.bf16.mxu1 %v508_v16  ;;  %v513_v25 = vld [vmem:[%s682_s3 + $0x18] sm:$0xff]   ;;  %v517_v30 = vld [vmem:[%s682_s3 + $0x28] sm:$0xff]   ;;  %v518_v31 = vld [vmem:[%s682_s3 + $0x70] sm:$0xff]  }
   0xb   :  { %449 = vmatpush3.bf16.msra.mxu0 %v493_v5  ;;  %v519_v32 = vld [vmem:[%s682_s3 + $0x30] sm:$0xff]   ;;  %v520_v33 = vld [vmem:[%s682_s3 + $0x78] sm:$0xff]   ;;  %v204_v41 = vld [vmem:[%s683_s0] sm:$0xf] }
   0xc   :  { %450 = vmatprep.subr.bf16.mxu0 %v494_v6  ;;  %v521_v34 = vld [vmem:[%s682_s3 + $0x38] sm:$0xff]   ;;  %v426_v43 = vld [vmem:[%s684_s4] ss:$0 sm:$0xff] }
   0xd   :  { %469 = vmatpush3.bf16.msra.mxu1 %v509_v18  ;;  %v443_v49 = vld [vmem:[%s685_s5] ss:$0 sm:$0xff] }
   0xe   :  { %470 = vmatprep.subr.bf16.mxu1 %v510_v19 }
   0xf   :  { %451 = vmatpush3.bf16.msra.mxu0 %v495_v7 }
  0x10   :  { %452 = vmatprep.subr.bf16.mxu0 %v496_v8 }
  0x11   :  { %471 = vmatpush3.bf16.msra.mxu1 %v511_v22 }
  0x12   :  { %472 = vmatprep.subr.bf16.mxu1 %v512_v23 }
  0x13   :  { %453 = vmatpush3.bf16.msra.mxu0 %v497_v9 }
  0x14   :  { %454 = vmatprep.subr.bf16.mxu0 %v498_v10 }
  0x15   :  { %473 = vmatpush3.bf16.msra.mxu1 %v513_v25 }
  0x16   :  { %474 = vmatprep.subr.bf16.mxu1 %v514_v26 }
  0x17   :  { %455 = vmatpush3.bf16.msra.mxu0 %v499_v12 }
  0x18   :  { %456 = vmatprep.subr.bf16.mxu0 %v500_v17 }
  0x19   :  { %475 = vmatpush3.bf16.msra.mxu1 %v515_v28 }
  0x1a   :  { %476 = vmatprep.subr.bf16.mxu1 %v516_v29 }
  0x1b   :  { %457 = vmatpush3.bf16.msra.mxu0 %v501_v20 }
  0x1c   :  { %458 = vmatprep.subr.bf16.mxu0 %v502_v21 }
  0x1d   :  { %477 = vmatpush3.bf16.msra.mxu1 %v517_v30 }
  0x1e   :  { %478 = vmatprep.subr.bf16.mxu1 %v518_v31 }
  0x1f   :  { %459 = vmatpush3.bf16.msra.mxu0 %v503_v24 }
  0x21   :  { %479 = vmatpush3.bf16.msra.mxu1 %v519_v32 }
  0x22   :  { %197 = vmatmul.mubr.bf16.vlgmr.msra.gmra.mrb[0].mxu0 %v408_v27  ;;  %480 = vmatprep.subr.bf16.mxu1 %v520_v33 }
  0x25   :  { %481 = vmatpush3.bf16.msra.mxu1 %v521_v34 }
  0xf5   :  { %v460_v35 = vpop.f32.mrb[0].mxu0 }
  0xf6   :  { %v461_v36 = vpop.f32.mrb[1].mxu0 }
  0xf7   :  { %v463_v37 = vpop.f32.mrb[2].mxu0  ;;  %v462_v38 = vadd.f32 %v461_v36, %v460_v35 }
  0xf8   :  { %v464_v39 = vpop.f32.mrb[3].mxu0 }
  0xf9   :  { %v205_v40 = vpack.c.bf16 %v462_v38, %v462_v38 }
  0xfb   :  { %373 = vmatprep.mubr.bf16.mxu1 %v205_v40 }
  0xfc   :  { %374 = vmatmul.mubr.bf16.vlgmr.msra.gmra.mrb[0].mxu1 %v204_v41 }
 0x1cf   :  { %v482_v42 = vpop.f32.mrb[0].mxu1 }
 0x1d0   :  { %v483_v44 = vpop.f32.mrb[1].mxu1 }
 0x1d1   :  { %v484_v45 = vadd.f32 %v483_v44, %v482_v42  ;;  %v485_v46 = vpop.f32.mrb[2].mxu1 }
 0x1d2   :  { %v486_v47 = vpop.f32.mrb[3].mxu1 }
 0x1d3   :  { %v376_v48 = vadd.f32 %v484_v45, %v426_v43 }
 0x1d5   :  { %v381_v50 = vmax.f32 %v376_v48, 0.0 }
 0x1d7   :  { %v389_v51 = vmul.f32 %v443_v49, %v381_v50 }
 0x1d9   :  { %v391_v52 = vsel %vm390_vm0, %v389_v51, 0.0 }
 0x1da   :  { %392 = vadd.xlane.f32.xlu0 %v391_v52 }
 0x267   :  { %v393_v54 = vpop.xlane.xlu0 %392 }
 0x268   :  { %v396_v55 = vadd.f32 %v395_v53, %v393_v54 }
 0x26a   :  { %v397_v56 = vsub.f32 0.0, %v396_v55 }
 0x26c   :  { %v398_v57 = vmul.f32 1.442695, %v397_v56 }
 0x26e   :  { %522 = vpow2.f32 %v398_v57 }
 0x278   :  { %v523_v58 = vpop.eup %522 }
 0x279   :  { %v400_v59 = vadd.f32 1.0, %v523_v58 }
 0x27b   :  { %524 = vrcp.f32 %v400_v59 }
 0x285   :  { %v525_v60 = vpop.eup %524 }
 0x286   :  { %403 = vst.msk [vmem:[%s687_s7] sm:$0xff] %vm402_vm1, %v525_v60 }

</bundles_post_ra>
